<compile_context>
chip_gen: v6e
topology: v6e:2x2x1
jax: 0.10.0
libtpu: 0.0.40
codegen_flags: <defaults>
</compile_context>

<pallas_src>
import jax
import jax.numpy as jnp
from jax import lax
from jax.experimental import pallas as pl
from jax.experimental.pallas import tpu as pltpu


def _sigmoid(v):
    # Exact sigmoid as a single EUP op (tanh); keeps the VPU slots free and
    # removes the error of the previous approximate-reciprocal formulation.
    return 0.5 * jnp.tanh(0.5 * v) + 0.5


def ca_layer_kernel(scal_ref,                                   # SMEM (3,)
                    x_ref,                                      # (Bt*C, HW)
                    erept_ref, erep_ref,                        # (Bt, BtC), (BtC, Bt)
                    wz_ref,                                     # (BtC, 1)
                    w1_ref, b1_ref, w2_ref, b2_ref,             # SE MLP (tiled)
                    t1_ref, t2_ref,                             # (HW, HW) Toeplitz
                    o_ref):                                     # (Bt*C, HW)
    x2 = x_ref[...].astype(jnp.float32)                         # (BtC, HW)
    inv_hw = 1.0 / x2.shape[1]

    # ---- branch 1: global average pool + squeeze/excite MLP (batched) ----
    pooled = jnp.sum(x2, axis=1, keepdims=True) * inv_hw        # (BtC, 1)
    # h[b, m] = relu(sum_c w1[m, c] * pooled[b, c] + b1[m])
    h = jnp.dot(erept_ref[...], pooled * w1_ref[...],
                preferred_element_type=jnp.float32) + b1_ref[...]   # (Bt, mid)
    h = jnp.maximum(h, 0.0)
    hrep = jnp.dot(erep_ref[...], h,
                   preferred_element_type=jnp.float32)              # (BtC, mid)
    # y1[b*C + c] = sigmoid(sum_m w2[c, m] * h[b, m] + b2[c])
    y1 = _sigmoid(jnp.sum(hrep * w2_ref[...], axis=1, keepdims=True)
                  + b2_ref[...])                                    # (BtC, 1)

    # ---- branch 2: 1x1 conv (C -> 1) + ReLU, then two 13x13 convs ----
    # z[b, q] = sum_c wz[c] * x[b, c, q]   (group contraction over C, on MXU)
    z = jnp.dot(erept_ref[...], x2 * wz_ref[...],
                preferred_element_type=jnp.float32)                 # (Bt, HW)
    z = jnp.maximum(z + scal_ref[0], 0.0)
    z = jnp.maximum(jnp.dot(z, t1_ref[...],
                            preferred_element_type=jnp.float32) + scal_ref[1],
                    0.0)
    y2 = _sigmoid(jnp.dot(z, t2_ref[...],
                          preferred_element_type=jnp.float32) + scal_ref[2])  # (Bt, HW)
    # replicate each image's y2 map across its C channel rows (MXU)
    y2rep = jnp.dot(erep_ref[...], y2,
                    preferred_element_type=jnp.float32)             # (BtC, HW)

    # ---- final modulation: x * (y1 (x) y2), lane-dense store ----
    o_ref[...] = (x2 * y1 * y2rep).astype(o_ref.dtype)


def _make_toeplitz(kmat, H, W):
    """(HW, HW) matrix T with out_flat = in_flat @ T implementing the
    zero-padded KxK cross-correlation (PyTorch Conv2d semantics)."""
    K = kmat.shape[0]
    P = K // 2
    di = jnp.arange(H)[:, None] - jnp.arange(H)[None, :] + P    # i  - i' + P
    dj = jnp.arange(W)[:, None] - jnp.arange(W)[None, :] + P    # j  - j' + P
    vi = (di >= 0) & (di < K)
    vj = (dj >= 0) & (dj < K)
    ki = jnp.clip(di, 0, K - 1)
    kj = jnp.clip(dj, 0, K - 1)
    t4 = kmat[ki[:, None, :, None], kj[None, :, None, :]]       # (H, W, H, W)
    t4 = t4 * (vi[:, None, :, None] & vj[None, :, None, :]).astype(kmat.dtype)
    return t4.reshape(H * W, H * W)


def _make_group_mats(bt, c):
    """0/1 group matrices: erep (Bt*C, Bt) replicates one row per image to its
    C channel rows; erep.T sums channel rows back to one row per image."""
    erep = (jnp.arange(bt * c)[:, None] // c
            == jnp.arange(bt)[None, :]).astype(jnp.float32)
    return erep, erep.T


def _pick_block_b(batch, bytes_per_image, target_bytes=8 << 20, max_block_b=64):
    """Largest Bt (divisor of batch) with an x-block near target_bytes.
    No forced batch//2 split: on 1-TC chips (v5e/v6e) a single big step
    amortizes the ~0.35us/step overhead; on v7x large batches still split
    naturally.  max_block_b bounds the (Bt, Bt*C) group matrices (their size
    grows quadratically with Bt) while keeping multi-MiB blocks."""
    bt = max(1, min(batch, max_block_b, target_bytes // max(bytes_per_image, 1)))
    while batch % bt:
        bt -= 1
    return bt


def ca_layer(x, params, block_b=None):
    B, C, H, W = x.shape
    HW = H * W
    mid = params["w1"].shape[0]

    Bt = block_b or _pick_block_b(B, C * HW * x.dtype.itemsize)
    if (Bt * C) % 8 or HW % 128:
        Bt = B                      # full-array block is always a legal BlockSpec
    BtC = Bt * C

    # (B, C, H, W) -> (B*C, HW): free in HBM, lane-dense in VMEM.
    x2 = x.reshape(B * C, HW)
    erep, erep_t = _make_group_mats(Bt, C)
    wztil = jnp.tile(params["wz"].reshape(C, 1), (Bt, 1))       # (BtC, 1)
    w1til = jnp.tile(params["w1"].T, (Bt, 1))                   # (BtC, mid)
    b1row = params["b1"].reshape(1, mid)                        # (1, mid)
    w2til = jnp.tile(params["w2"], (Bt, 1))                     # (BtC, mid)
    b2til = jnp.tile(params["b2"].reshape(C, 1), (Bt, 1))       # (BtC, 1)
    # TODO(synk): for large images an (HW, HW) Toeplitz becomes impractical --
    # fall back to banded matmuls with all Bt z-maps stacked along M instead.
    t1 = _make_toeplitz(params["k1"], H, W)
    t2 = _make_toeplitz(params["k2"], H, W)

    def _full(shape):
        return pl.BlockSpec(shape, lambda g: (0,) * len(shape))

    block_bytes = BtC * HW * x.dtype.itemsize
    vmem_need = (4 * block_bytes                 # x + out, double-buffered
                 + 4 * HW * HW * 4               # two Toeplitz matrices (x2 bufs)
                 + 6 * BtC * max(Bt, mid) * 4    # group / tiled weight matrices
                 + (2 << 20))
    vmem_limit = int(min(max(vmem_need, 16 << 20), 32 << 20))

    kernel = pl.pallas_call(
        ca_layer_kernel,
        out_shape=jax.ShapeDtypeStruct((B * C, HW), x.dtype),
        grid=(B // Bt,),
        in_specs=[
            pl.BlockSpec(memory_space=pltpu.MemorySpace.SMEM),  # scal (3,)
            pl.BlockSpec((BtC, HW), lambda g: (g, 0)),          # x rows
            _full((Bt, BtC)),                                   # erep^T
            _full((BtC, Bt)),                                   # erep
            _full((BtC, 1)),                                    # wz (tiled)
            _full((BtC, mid)),                                  # w1^T (tiled)
            _full((1, mid)),                                    # b1
            _full((BtC, mid)),                                  # w2 (tiled)
            _full((BtC, 1)),                                    # b2 (tiled)
            _full((HW, HW)),                                    # Toeplitz conv 1
            _full((HW, HW)),                                    # Toeplitz conv 2
        ],
        out_specs=pl.BlockSpec((BtC, HW), lambda g: (g, 0)),
        compiler_params=pltpu.CompilerParams(
            dimension_semantics=("parallel",),
            vmem_limit_bytes=vmem_limit),
    )
    # TODO(synk): if the surrounding model runs bf16, pass x / produce the
    # output in bf16 here (keep the in-kernel accumulation in f32).
    out2 = kernel(params["scal"], x2, erep_t, erep, wztil, w1til, b1row,
                  w2til, b2til, t1, t2)
    return out2.reshape(B, C, H, W)


def ca_layer_ref(x, p):
    """Pure-JAX reference (matches the PyTorch forward semantics, NCHW)."""
    pad = p["k1"].shape[0] // 2

    # branch 1: SE MLP on the global average pool
    pooled = x.mean(axis=(2, 3))                                     # (B, C)
    h = jnp.maximum(pooled @ p["w1"].T + p["b1"], 0.0)               # (B, mid)
    y1 = jax.nn.sigmoid(h @ p["w2"].T + p["b2"])                     # (B, C)

    # branch 2: 1x1 conv -> ReLU -> 13x13 conv -> ReLU -> 13x13 conv -> sigmoid
    z = jnp.einsum("bchw,c->bhw", x, p["wz"]) + p["scal"][0]
    z = jnp.maximum(z, 0.0)[:, None]                                 # (B,1,H,W)
    z = lax.conv_general_dilated(z, p["k1"][None, None], (1, 1),
                                 [(pad, pad), (pad, pad)]) + p["scal"][1]
    z = jnp.maximum(z, 0.0)
    z = lax.conv_general_dilated(z, p["k2"][None, None], (1, 1),
                                 [(pad, pad), (pad, pad)]) + p["scal"][2]
    y2 = jax.nn.sigmoid(z)                                           # (B,1,H,W)

    return x * (y1[:, :, None, None] * y2)


if __name__ == "__main__":
    B, C, H, W = 2, 32, 16, 16
    reduction, K = 16, 13
    mid = C // reduction

    key = jax.random.PRNGKey(0)
    ks = jax.random.split(key, 9)
    x = jax.random.normal(ks[0], (B, C, H, W), jnp.float32)

    params = {
        # conv_du1[0]: Conv2d(C, mid, 1)   -> weight (mid, C), bias (mid,)
        "w1": 0.1 * jax.random.normal(ks[1], (mid, C), jnp.float32),
        "b1": 0.1 * jax.random.normal(ks[2], (mid,), jnp.float32),
        # conv_du1[2]: Conv2d(mid, C, 1)   -> weight (C, mid), bias (C,)
        "w2": 0.1 * jax.random.normal(ks[3], (C, mid), jnp.float32),
        "b2": 0.1 * jax.random.normal(ks[4], (C,), jnp.float32),
        # conv_du2[0]: Conv2d(C, 1, 1)     -> weight (C,); bias in scal[0]
        "wz": 0.1 * jax.random.normal(ks[5], (C,), jnp.float32),
        # conv_du2[2], conv_du2[4]: Conv2d(1, 1, 13, padding=6)
        "k1": 0.02 * jax.random.normal(ks[6], (K, K), jnp.float32),
        "k2": 0.02 * jax.random.normal(ks[7], (K, K), jnp.float32),
        # scal = [bias_1x1, bias_conv13_a, bias_conv13_b]
        "scal": 0.1 * jax.random.normal(ks[8], (3,), jnp.float32),
    }

    out = jax.block_until_ready(ca_layer(x, params))
    ref = ca_layer_ref(x, params)

    assert out.shape == (B, C, H, W)
    # The kernel itself is exact (tanh-based sigmoid); the tolerance covers
    # MXU default-precision f32 matmuls vs. the XLA conv/einsum reference.
    assert jnp.allclose(out, ref, rtol=5e-3, atol=5e-3), (
        float(jnp.max(jnp.abs(out - ref))))

    print("KERNEL_OK")
</pallas_src>

<mosaic_0001>
module attributes {stable_mosaic.version = 11 : i64} {
  func.func @ca_layer_kernel(%arg0: i32, %arg1: memref<3xf32, #tpu.memory_space<smem>>, %arg2: memref<64x256xf32, #tpu.memory_space<vmem>>, %arg3: memref<2x64xf32, #tpu.memory_space<vmem>>, %arg4: memref<64x2xf32, #tpu.memory_space<vmem>>, %arg5: memref<64x1xf32, #tpu.memory_space<vmem>>, %arg6: memref<64x2xf32, #tpu.memory_space<vmem>>, %arg7: memref<1x2xf32, #tpu.memory_space<vmem>>, %arg8: memref<64x2xf32, #tpu.memory_space<vmem>>, %arg9: memref<64x1xf32, #tpu.memory_space<vmem>>, %arg10: memref<256x256xf32, #tpu.memory_space<vmem>>, %arg11: memref<256x256xf32, #tpu.memory_space<vmem>>, %arg12: memref<64x256xf32, #tpu.memory_space<vmem>>) attributes {dimension_semantics = [#tpu.dimension_semantics<parallel>], iteration_bounds = array<i64: 1>, scalar_prefetch = 0 : i64, scratch_operands = 0 : i64, tpu.core_type = #tpu.core_type<tc>, window_params = [{transform_indices = @transform_0, window_bounds = array<i64: 3>}, {transform_indices = @transform_1, window_bounds = array<i64: 64, 256>}, {pipeline_mode = #tpu.pipeline_mode<synchronous>, transform_indices = @transform_2, window_bounds = array<i64: 2, 64>}, {pipeline_mode = #tpu.pipeline_mode<synchronous>, transform_indices = @transform_3, window_bounds = array<i64: 64, 2>}, {pipeline_mode = #tpu.pipeline_mode<synchronous>, transform_indices = @transform_4, window_bounds = array<i64: 64, 1>}, {pipeline_mode = #tpu.pipeline_mode<synchronous>, transform_indices = @transform_5, window_bounds = array<i64: 64, 2>}, {pipeline_mode = #tpu.pipeline_mode<synchronous>, transform_indices = @transform_6, window_bounds = array<i64: 1, 2>}, {pipeline_mode = #tpu.pipeline_mode<synchronous>, transform_indices = @transform_7, window_bounds = array<i64: 64, 2>}, {pipeline_mode = #tpu.pipeline_mode<synchronous>, transform_indices = @transform_8, window_bounds = array<i64: 64, 1>}, {pipeline_mode = #tpu.pipeline_mode<synchronous>, transform_indices = @transform_9, window_bounds = array<i64: 256, 256>}, {pipeline_mode = #tpu.pipeline_mode<synchronous>, transform_indices = @transform_10, window_bounds = array<i64: 256, 256>}, {transform_indices = @transform_11, window_bounds = array<i64: 64, 256>}]} {
    %c0 = arith.constant 0 : index
    %c0_0 = arith.constant 0 : index
    %0 = vector.load %arg2[%c0, %c0_0] : memref<64x256xf32, #tpu.memory_space<vmem>>, vector<64x256xf32>
    %cst = arith.constant dense<0.000000e+00> : vector<64xf32>
    %1 = vector.multi_reduction <add>, %0, %cst [1] : vector<64x256xf32> to vector<64xf32>
    %2 = vector.shape_cast %1 : vector<64xf32> to vector<64x1xf32>
    %cst_1 = arith.constant 3.906250e-03 : f32
    %3 = vector.broadcast %cst_1 : f32 to vector<64x1xf32>
    %4 = arith.mulf %2, %3 : vector<64x1xf32>
    %c0_2 = arith.constant 0 : index
    %c0_3 = arith.constant 0 : index
    %5 = vector.load %arg3[%c0_2, %c0_3] : memref<2x64xf32, #tpu.memory_space<vmem>>, vector<2x64xf32>
    %c0_4 = arith.constant 0 : index
    %c0_5 = arith.constant 0 : index
    %6 = vector.load %arg6[%c0_4, %c0_5] : memref<64x2xf32, #tpu.memory_space<vmem>>, vector<64x2xf32>
    %7 = vector.broadcast %4 : vector<64x1xf32> to vector<64x2xf32>
    %8 = arith.mulf %7, %6 : vector<64x2xf32>
    %cst_6 = arith.constant dense<0.000000e+00> : vector<2x2xf32>
    %9 = tpu.matmul %5, %8, %cst_6 {dimension_numbers = #tpu.dot_dimension_numbers<[1], [0], [0], [1], [0, 0, 1, 1], [], []>} : vector<2x64xf32>, vector<64x2xf32>, vector<2x2xf32> -> vector<2x2xf32>
    %c0_7 = arith.constant 0 : index
    %c0_8 = arith.constant 0 : index
    %10 = vector.load %arg7[%c0_7, %c0_8] : memref<1x2xf32, #tpu.memory_space<vmem>>, vector<1x2xf32>
    %11 = vector.broadcast %10 : vector<1x2xf32> to vector<2x2xf32>
    %12 = arith.addf %9, %11 : vector<2x2xf32>
    %cst_9 = arith.constant 0.000000e+00 : f32
    %13 = vector.broadcast %cst_9 : f32 to vector<2x2xf32>
    %14 = arith.maximumf %12, %13 : vector<2x2xf32>
    %c0_10 = arith.constant 0 : index
    %c0_11 = arith.constant 0 : index
    %15 = vector.load %arg4[%c0_10, %c0_11] : memref<64x2xf32, #tpu.memory_space<vmem>>, vector<64x2xf32>
    %cst_12 = arith.constant dense<0.000000e+00> : vector<64x2xf32>
    %16 = tpu.matmul %15, %14, %cst_12 {dimension_numbers = #tpu.dot_dimension_numbers<[1], [0], [0], [1], [0, 0, 1, 1], [], []>} : vector<64x2xf32>, vector<2x2xf32>, vector<64x2xf32> -> vector<64x2xf32>
    %c0_13 = arith.constant 0 : index
    %c0_14 = arith.constant 0 : index
    %17 = vector.load %arg8[%c0_13, %c0_14] : memref<64x2xf32, #tpu.memory_space<vmem>>, vector<64x2xf32>
    %18 = arith.mulf %16, %17 : vector<64x2xf32>
    %cst_15 = arith.constant dense<0.000000e+00> : vector<64xf32>
    %19 = vector.multi_reduction <add>, %18, %cst_15 [1] : vector<64x2xf32> to vector<64xf32>
    %20 = vector.shape_cast %19 : vector<64xf32> to vector<64x1xf32>
    %c0_16 = arith.constant 0 : index
    %c0_17 = arith.constant 0 : index
    %21 = vector.load %arg9[%c0_16, %c0_17] : memref<64x1xf32, #tpu.memory_space<vmem>>, vector<64x1xf32>
    %22 = arith.addf %20, %21 : vector<64x1xf32>
    %cst_18 = arith.constant 5.000000e-01 : f32
    %23 = vector.broadcast %cst_18 : f32 to vector<64x1xf32>
    %24 = arith.mulf %23, %22 : vector<64x1xf32>
    %25 = math.tanh %24 : vector<64x1xf32>
    %cst_19 = arith.constant 5.000000e-01 : f32
    %26 = vector.broadcast %cst_19 : f32 to vector<64x1xf32>
    %27 = arith.mulf %26, %25 : vector<64x1xf32>
    %cst_20 = arith.constant 5.000000e-01 : f32
    %28 = vector.broadcast %cst_20 : f32 to vector<64x1xf32>
    %29 = arith.addf %27, %28 : vector<64x1xf32>
    %c0_21 = arith.constant 0 : index
    %c0_22 = arith.constant 0 : index
    %30 = vector.load %arg3[%c0_21, %c0_22] : memref<2x64xf32, #tpu.memory_space<vmem>>, vector<2x64xf32>
    %c0_23 = arith.constant 0 : index
    %c0_24 = arith.constant 0 : index
    %31 = vector.load %arg5[%c0_23, %c0_24] : memref<64x1xf32, #tpu.memory_space<vmem>>, vector<64x1xf32>
    %32 = vector.broadcast %31 : vector<64x1xf32> to vector<64x256xf32>
    %33 = arith.mulf %0, %32 : vector<64x256xf32>
    %cst_25 = arith.constant dense<0.000000e+00> : vector<2x256xf32>
    %34 = tpu.matmul %30, %33, %cst_25 {dimension_numbers = #tpu.dot_dimension_numbers<[1], [0], [0], [1], [0, 0, 1, 1], [], []>} : vector<2x64xf32>, vector<64x256xf32>, vector<2x256xf32> -> vector<2x256xf32>
    %c0_26 = arith.constant 0 : index
    %35 = memref.load %arg1[%c0_26] : memref<3xf32, #tpu.memory_space<smem>>
    %36 = vector.broadcast %35 : f32 to vector<2x256xf32>
    %37 = arith.addf %34, %36 : vector<2x256xf32>
    %cst_27 = arith.constant 0.000000e+00 : f32
    %38 = vector.broadcast %cst_27 : f32 to vector<2x256xf32>
    %39 = arith.maximumf %37, %38 : vector<2x256xf32>
    %c0_28 = arith.constant 0 : index
    %c0_29 = arith.constant 0 : index
    %40 = vector.load %arg10[%c0_28, %c0_29] : memref<256x256xf32, #tpu.memory_space<vmem>>, vector<256x256xf32>
    %cst_30 = arith.constant dense<0.000000e+00> : vector<2x256xf32>
    %41 = tpu.matmul %39, %40, %cst_30 {dimension_numbers = #tpu.dot_dimension_numbers<[1], [0], [0], [1], [0, 0, 1, 1], [], []>} : vector<2x256xf32>, vector<256x256xf32>, vector<2x256xf32> -> vector<2x256xf32>
    %c1 = arith.constant 1 : index
    %42 = memref.load %arg1[%c1] : memref<3xf32, #tpu.memory_space<smem>>
    %43 = vector.broadcast %42 : f32 to vector<2x256xf32>
    %44 = arith.addf %41, %43 : vector<2x256xf32>
    %cst_31 = arith.constant 0.000000e+00 : f32
    %45 = vector.broadcast %cst_31 : f32 to vector<2x256xf32>
    %46 = arith.maximumf %44, %45 : vector<2x256xf32>
    %c0_32 = arith.constant 0 : index
    %c0_33 = arith.constant 0 : index
    %47 = vector.load %arg11[%c0_32, %c0_33] : memref<256x256xf32, #tpu.memory_space<vmem>>, vector<256x256xf32>
    %cst_34 = arith.constant dense<0.000000e+00> : vector<2x256xf32>
    %48 = tpu.matmul %46, %47, %cst_34 {dimension_numbers = #tpu.dot_dimension_numbers<[1], [0], [0], [1], [0, 0, 1, 1], [], []>} : vector<2x256xf32>, vector<256x256xf32>, vector<2x256xf32> -> vector<2x256xf32>
    %c2 = arith.constant 2 : index
    %49 = memref.load %arg1[%c2] : memref<3xf32, #tpu.memory_space<smem>>
    %50 = vector.broadcast %49 : f32 to vector<2x256xf32>
    %51 = arith.addf %48, %50 : vector<2x256xf32>
    %cst_35 = arith.constant 5.000000e-01 : f32
    %52 = vector.broadcast %cst_35 : f32 to vector<2x256xf32>
    %53 = arith.mulf %52, %51 : vector<2x256xf32>
    %54 = math.tanh %53 : vector<2x256xf32>
    %cst_36 = arith.constant 5.000000e-01 : f32
    %55 = vector.broadcast %cst_36 : f32 to vector<2x256xf32>
    %56 = arith.mulf %55, %54 : vector<2x256xf32>
    %cst_37 = arith.constant 5.000000e-01 : f32
    %57 = vector.broadcast %cst_37 : f32 to vector<2x256xf32>
    %58 = arith.addf %56, %57 : vector<2x256xf32>
    %c0_38 = arith.constant 0 : index
    %c0_39 = arith.constant 0 : index
    %59 = vector.load %arg4[%c0_38, %c0_39] : memref<64x2xf32, #tpu.memory_space<vmem>>, vector<64x2xf32>
    %cst_40 = arith.constant dense<0.000000e+00> : vector<64x256xf32>
    %60 = tpu.matmul %59, %58, %cst_40 {dimension_numbers = #tpu.dot_dimension_numbers<[1], [0], [0], [1], [0, 0, 1, 1], [], []>} : vector<64x2xf32>, vector<2x256xf32>, vector<64x256xf32> -> vector<64x256xf32>
    %61 = vector.broadcast %29 : vector<64x1xf32> to vector<64x256xf32>
    %62 = arith.mulf %0, %61 : vector<64x256xf32>
    %63 = arith.mulf %62, %60 : vector<64x256xf32>
    %c0_41 = arith.constant 0 : index
    %c0_42 = arith.constant 0 : index
    %64 = vector.load %arg12[%c0_41, %c0_42] : memref<64x256xf32, #tpu.memory_space<vmem>>, vector<64x256xf32>
    tpu.vector_store %arg12[%c0_41, %c0_42], %63 {strides = array<i32>} : memref<64x256xf32, #tpu.memory_space<vmem>>, vector<64x256xf32>,
    return
  }
  func.func @transform_0(%arg0: i32) -> i32 {
    %c0_i32 = arith.constant 0 : i32
    %c0_i32_0 = arith.constant 0 : i32
    return %c0_i32 : i32
  }
  func.func @transform_1(%arg0: i32) -> (i32, i32) {
    %c0_i32 = arith.constant 0 : i32
    %c0_i32_0 = arith.constant 0 : i32
    return %arg0, %c0_i32 : i32, i32
  }
  func.func @transform_2(%arg0: i32) -> (i32, i32) {
    %c0_i32 = arith.constant 0 : i32
    %c0_i32_0 = arith.constant 0 : i32
    %c0_i32_1 = arith.constant 0 : i32
    return %c0_i32, %c0_i32_0 : i32, i32
  }
  func.func @transform_3(%arg0: i32) -> (i32, i32) {
    %c0_i32 = arith.constant 0 : i32
    %c0_i32_0 = arith.constant 0 : i32
    %c0_i32_1 = arith.constant 0 : i32
    return %c0_i32, %c0_i32_0 : i32, i32
  }
  func.func @transform_4(%arg0: i32) -> (i32, i32) {
    %c0_i32 = arith.constant 0 : i32
    %c0_i32_0 = arith.constant 0 : i32
    %c0_i32_1 = arith.constant 0 : i32
    return %c0_i32, %c0_i32_0 : i32, i32
  }
  func.func @transform_5(%arg0: i32) -> (i32, i32) {
    %c0_i32 = arith.constant 0 : i32
    %c0_i32_0 = arith.constant 0 : i32
    %c0_i32_1 = arith.constant 0 : i32
    return %c0_i32, %c0_i32_0 : i32, i32
  }
  func.func @transform_6(%arg0: i32) -> (i32, i32) {
    %c0_i32 = arith.constant 0 : i32
    %c0_i32_0 = arith.constant 0 : i32
    %c0_i32_1 = arith.constant 0 : i32
    return %c0_i32, %c0_i32_0 : i32, i32
  }
  func.func @transform_7(%arg0: i32) -> (i32, i32) {
    %c0_i32 = arith.constant 0 : i32
    %c0_i32_0 = arith.constant 0 : i32
    %c0_i32_1 = arith.constant 0 : i32
    return %c0_i32, %c0_i32_0 : i32, i32
  }
  func.func @transform_8(%arg0: i32) -> (i32, i32) {
    %c0_i32 = arith.constant 0 : i32
    %c0_i32_0 = arith.constant 0 : i32
    %c0_i32_1 = arith.constant 0 : i32
    return %c0_i32, %c0_i32_0 : i32, i32
  }
  func.func @transform_9(%arg0: i32) -> (i32, i32) {
    %c0_i32 = arith.constant 0 : i32
    %c0_i32_0 = arith.constant 0 : i32
    %c0_i32_1 = arith.constant 0 : i32
    return %c0_i32, %c0_i32_0 : i32, i32
  }
  func.func @transform_10(%arg0: i32) -> (i32, i32) {
    %c0_i32 = arith.constant 0 : i32
    %c0_i32_0 = arith.constant 0 : i32
    %c0_i32_1 = arith.constant 0 : i32
    return %c0_i32, %c0_i32_0 : i32, i32
  }
  func.func @transform_11(%arg0: i32) -> (i32, i32) {
    %c0_i32 = arith.constant 0 : i32
    %c0_i32_0 = arith.constant 0 : i32
    return %arg0, %c0_i32 : i32, i32
  }
}

</mosaic_0001>

<bundles_post_ra>
// kernel: tpu_custom_call.1
= control target key start
LH: loop header
LB: loop body
LE: loop exit
PB: predicated region body
PF: predicated region fallthrough
CT: control target
= control target key end

     0   :  { %16 = vsyncpa [#allocation5], 0  ;;  %s1774_s0 = inlined_call_operand.vmem [shape: f32[3], index: 0, kind: input, shape index: {}]   ;;  %s1775_s1 = inlined_call_operand.vmem [shape: f32[64,256], index: 1, kind: input, shape index: {}]   ;;  %s1776_s2 = inlined_call_operand.vmem [shape: f32[2,64], index: 2, kind: input, shape index: {}]   ;;  %s1777_s3 = inlined_call_operand.vmem [shape: f32[64,2], index: 3, kind: input, shape index: {}]   ;;  %s1778_s4 = inlined_call_operand.vmem [shape: f32[64,1], index: 4, kind: input, shape index: {}]   ;;  %s1779_s5 = inlined_call_operand.vmem [shape: f32[64,2], index: 5, kind: input, shape index: {}]   ;;  %s1780_s6 = inlined_call_operand.vmem [shape: f32[1,2], index: 6, kind: input, shape index: {}]   ;;  %s1781_s7 = inlined_call_operand.vmem [shape: f32[64,2], index: 7, kind: input, shape index: {}]   ;;  %s1782_s8 = inlined_call_operand.vmem [shape: f32[64,1], index: 8, kind: input, shape index: {}]   ;;  %s1783_s9 = inlined_call_operand.hbm [shape: f32[256,256], index: 9, kind: input, shape index: {}]   ;;  %s1784_s10 = inlined_call_operand.hbm [shape: f32[256,256], index: 10, kind: input, shape index: {}]   ;;  %s1785_s11 = inlined_call_operand.hbm [shape: f32[64,256], index: 11, kind: output, shape index: {}]  }
   0x1   :  { %17 = vsyncpa [#allocation3], 0 }
   0x2   :  { %18 = vsyncpa [#allocation8], 0 }
   0x3   :  { %19 = vsyncpa [#allocation4], 0  ;;  %s26_s19 = sshll.u32 %s1774_s0, 4  ;;  %s27_s19 = int_to_ptr.vmem [resolvable:$true] %s26_s19 }
   0x4   :  { %s1228_s20 = scalar_lea.vmem %s27_s19, 16  ;;  %p1233_p1 = scmp.lt.s32.totalorder %s27_s19, %s27_s19 }
   0x5   :  { %p1229_p0 = scmp.ne.s32.totalorder %s27_s19, %s1228_s20  ;;  %p1234_p2 = scmp.lt.s32.totalorder %s1228_s20, %s1228_s20 }
   0x7   :  { %p1235_p3 = por %p1234_p2, %p1233_p1 }
   0x9   :  { %p1236_p4 = pnand %p1235_p3, %p1229_p0 }
   0xb   :  { %1239 = shalt.err (!%p1236_p4)
}
   0xc   :  { %s1308_s21 = smov [#allocation2]   ;;  %s1309_s22 = smov [#allocation6]  }
   0xd   :  { %29 = dma.vmem_to_smem %s27_s19, 16, %s1308_s21, [#allocation5]  }
   0xe   :  { %s51_s23 = sshll.u32 %s1309_s22, 4  ;;  %s52_s23 = int_to_ptr.vmem [resolvable:$true] %s51_s23 }
   0xf   :  { %s1248_s24 = scalar_lea.vmem %s52_s23, 8192  ;;  %p1253_p6 = scmp.lt.s32.totalorder %s52_s23, %s52_s23 }
  0x10   :  { %p1249_p5 = scmp.ne.s32.totalorder %s52_s23, %s1248_s24  ;;  %p1254_p7 = scmp.lt.s32.totalorder %s1248_s24, %s1248_s24 }
  0x12   :  { %p1255_p8 = por %p1254_p7, %p1253_p6 }
  0x14   :  { %p1256_p9 = pnand %p1255_p8, %p1249_p5 }
  0x16   :  { %1259 = shalt.err (!%p1256_p9)
}
  0x17   :  { %s1310_s0 = smov 256   ;;  %s1311_s25 = smov 16  }
  0x18   :  { %57 = dma.hbm_to_vmem [thread:$0]  %s1783_s9, 8192, %s52_s23, [#allocation3], %s1310_s0, %s1310_s0, %s1311_s25  }
  0x19   :  { %s1312_s28 = smov [#allocation7]  }
  0x1a   :  { %s63_s29 = sshll.u32 %s1312_s28, 4  ;;  %s64_s29 = int_to_ptr.vmem [resolvable:$true] %s63_s29 }
  0x1b   :  { %s1268_s30 = scalar_lea.vmem %s64_s29, 8192  ;;  %p1273_p11 = scmp.lt.s32.totalorder %s64_s29, %s64_s29 }
  0x1c   :  { %p1269_p10 = scmp.ne.s32.totalorder %s64_s29, %s1268_s30  ;;  %p1274_p12 = scmp.lt.s32.totalorder %s1268_s30, %s1268_s30 }
  0x1e   :  { %p1275_p13 = por %p1274_p12, %p1273_p11 }
  0x20   :  { %p1276_p0 = pnand %p1275_p13, %p1269_p10 }
  0x22   :  { %1279 = shalt.err (!%p1276_p0)
}
  0x23   :  { %69 = dma.hbm_to_vmem [thread:$0]  %s1784_s10, 8192, %s64_s29, [#allocation8], %s1310_s0, %s1310_s0, %s1311_s25  }
  0x24   :  { %1300 = dma.done.wait [#allocation5], 16  }
  0x25   :  { %1301 = vsyncadd [#allocation5], 4294967280 }
  0x26   :  { %1302 = dma.done.wait [#allocation3], 8192  }
  0x27   :  { %1303 = vsyncadd [#allocation3], 4294959104 }
  0x28   :  { %1304 = dma.done.wait [#allocation8], 8192  }
  0x29   :  { %1305 = vsyncadd [#allocation8], 4294959104 }
  0x2a   :  { %79 = sfence }
  0x2b   :  { %v1395_v0 = vld [vmem:[%s1775_s1 + $0x70] sm:$0xff]  ;;  %v1400_v1 = vld [vmem:[%s1775_s1 + $0x78] sm:$0xff]  ;;  %v1405_v2 = vld [vmem:[%s1775_s1 + $0x60] sm:$0xff]  ;;  %v1313_v7 = vmov 0   ;;  %v1314_v25 = vmov 0.0   ;;  %vm1315_vm0 = vmmov 0  }
  0x2c   :  { %v117_v3 = vadd.f32 %v1400_v1, %v1395_v0  ;;  %v1412_v4 = vld [vmem:[%s1775_s1 + $0x68] sm:$0xff]  ;;  %v1417_v5 = vld [vmem:[%s1775_s1 + $0x50] sm:$0xff]  ;;  %v1422_v6 = vld [vmem:[%s1775_s1 + $0x58] sm:$0xff]  ;;  %1191 = vset.pattern.permute.xlu1 %v1313_v7  ;;  %1190 = vset.pattern.permute.xlu0 %v1313_v7  ;;  %vm152_vm1 = vcmask 523264   ;;  %vm235_vm2 = vcmask 15360   ;;  %vm260_vm3 = vcmask 1041408  }
  0x2d   :  { %v111_v8 = vadd.f32 %v1422_v6, %v1417_v5  ;;  %v1429_v9 = vld [vmem:[%s1775_s1 + $0x40] sm:$0xff]  ;;  %v1434_v10 = vld [vmem:[%s1775_s1 + $0x48] sm:$0xff]  ;;  %v114_v11 = vadd.f32 %v1412_v4, %v1405_v2  ;;  %v1443_v13 = vld [vmem:[%s1775_s1 + $0x30] sm:$0xff]  ;;  %1148 = vmatprep.subr.mxu1 %v1314_v25  ;;  %1164 = vmatprep.mubr.msk.f32.mxu1 %vm1315_vm0, %v1314_v25  ;;  %s1626_s13 = sld [smem:[#allocation2]]  ;;  %s1316_s19 = smov [#allocation9]  }
  0x2e   :  { %118 = vadd.xlane.f32.xlu0 %v117_v3  ;;  %v108_v12 = vadd.f32 %v1434_v10, %v1429_v9  ;;  %v1448_v14 = vld [vmem:[%s1775_s1 + $0x38] sm:$0xff]  ;;  %v1453_v15 = vld [vmem:[%s1775_s1 + $0x20] sm:$0xff]  ;;  %v1458_v16 = vld [vmem:[%s1775_s1 + $0x28] sm:$0xff]  ;;  %s1118_s24 = sld [smem:[#allocation2 + $0x1]]  ;;  %s1092_s20 = sshll.u32 %s1316_s19, 4  ;;  %s1093_s20 = int_to_ptr.vmem [resolvable:$true] %s1092_s20 }
  0x2f   :  { %112 = vadd.xlane.f32.xlu1 %v111_v8  ;;  %v105_v17 = vadd.f32 %v1448_v14, %v1443_v13  ;;  %v102_v18 = vadd.f32 %v1458_v16, %v1453_v15  ;;  %v1467_v19 = vld [vmem:[%s1775_s1 + $0x10] sm:$0xff]  ;;  %v1472_v20 = vld [vmem:[%s1775_s1 + $0x18] sm:$0xff]  ;;  %v1477_v21 = vld [vmem:[%s1775_s1] sm:$0xff]  ;;  %p1285_p2 = scmp.lt.s32.totalorder %s1093_s20, %s1093_s20 }
  0x30   :  { %v1482_v22 = vld [vmem:[%s1775_s1 + $0x8] sm:$0xff]  ;;  %v99_v23 = vadd.f32 %v1472_v20, %v1467_v19  ;;  %v463_v26 = vld [vmem:[%s1778_s4 + $0x30] sm:$0xff]  ;;  %v464_v28 = vld [vmem:[%s1778_s4 + $0x38] sm:$0xff] }
  0x31   :  { %v96_v24 = vadd.f32 %v1482_v22, %v1477_v21  ;;  %v462_v27 = vld [vmem:[%s1778_s4 + $0x28] sm:$0xff]  ;;  %v461_v29 = vld [vmem:[%s1778_s4 + $0x20] sm:$0xff]  ;;  %v460_v30 = vld [vmem:[%s1778_s4 + $0x18] sm:$0xff] }
  0x32   :  { %115 = vadd.xlane.f32.xlu0 %v114_v11  ;;  %v459_v31 = vld [vmem:[%s1778_s4 + $0x10] sm:$0xff]  ;;  %v458_v32 = vld [vmem:[%s1778_s4 + $0x8] sm:$0xff]  ;;  %v457_v33 = vld [vmem:[%s1778_s4] sm:$0xff] }
  0x33   :  { %109 = vadd.xlane.f32.xlu1 %v108_v12  ;;  %v136_v35 = vld [vmem:[%s1779_s5 + $0x38] sm:$0xff]  ;;  %v135_v39 = vld [vmem:[%s1779_s5 + $0x30] sm:$0xff]  ;;  %v134_v44 = vld [vmem:[%s1779_s5 + $0x28] sm:$0xff] }
  0x34   :  { %v133_v45 = vld [vmem:[%s1779_s5 + $0x20] sm:$0xff]  ;;  %v132_v48 = vld [vmem:[%s1779_s5 + $0x18] sm:$0xff]  ;;  %v131_v54 = vld [vmem:[%s1779_s5 + $0x10] sm:$0xff] }
  0x35   :  { %v130_v57 = vld [vmem:[%s1779_s5 + $0x8] sm:$0xff]  ;;  %v129_v62 = vld [vmem:[%s1779_s5] sm:$0xff] }
  0x36   :  { %106 = vadd.xlane.f32.xlu0 %v105_v17  ;;  %v128_v11 = vld [vmem:[%s1776_s2] sm:$0x3] }
  0x37   :  { %103 = vadd.xlane.f32.xlu1 %v102_v18 }
  0x3a   :  { %100 = vadd.xlane.f32.xlu0 %v99_v23 }
  0x3b   :  { %97 = vadd.xlane.f32.xlu1 %v96_v24 }
  0x4c   :  { %497 = vperm.xlu1 %1191, %v463_v26  }
  0x50   :  { %492 = vperm.xlu1 %1191, %v462_v27   ;;  %502 = vperm.xlu0 %1190, %v464_v28  }
  0x54   :  { %487 = vperm.xlu1 %1191, %v461_v29  }
  0x58   :  { %482 = vperm.xlu1 %1191, %v460_v30  }
  0x5c   :  { %477 = vperm.xlu1 %1191, %v459_v31  }
  0x60   :  { %472 = vperm.xlu1 %1191, %v458_v32  }
  0x64   :  { %467 = vperm.xlu1 %1191, %v457_v33  }
  0xb7   :  { %v119_v34 = vpop.xlane.xlu0 %118 }
  0xb8   :  { %v127_v36 = vmul.f32 0.00390625, %v119_v34  ;;  %v113_v37 = vpop.xlane.xlu1 %112  ;;  %v1580_v34 = vld [vmem:[%s1777_s3 + $0x8] sm:$0xff] }
  0xb9   :  { %v125_v42 = vmul.f32 0.00390625, %v113_v37  ;;  %v1586_v37 = vld [vmem:[%s1777_s3 + $0x10] sm:$0xff] }
  0xba   :  { %v144_v38 = vmul.f32 %v136_v35, %v127_v36  ;;  %v627_v35 = vld [vmem:[#allocation6 + $0xf8] sm:$0xff]  ;;  %v626_v36 = vld [vmem:[#allocation6 + $0xf0] sm:$0xff] }
  0xbb   :  { %v116_v40 = vpop.xlane.xlu0 %115  ;;  %v142_v50 = vmul.f32 %v134_v44, %v125_v42  ;;  %v622_v42 = vld [vmem:[#allocation6 + $0xd0] sm:$0xff]  ;;  %v621_v44 = vld [vmem:[#allocation6 + $0xc8] sm:$0xff] }
  0xbc   :  { %v126_v41 = vmul.f32 0.00390625, %v116_v40  ;;  %1149 = vmatpush3.msra.mxu1 %v144_v38  ;;  %v110_v43 = vpop.xlane.xlu1 %109  ;;  %v625_v38 = vld [vmem:[#allocation6 + $0xe8] sm:$0xff]  ;;  %v1596_v40 = vld [vmem:[%s1777_s3 + $0x18] sm:$0xff] }
  0xbd   :  { %1150 = vmatprep.subr.mxu1 %v1314_v25  ;;  %v124_v46 = vmul.f32 0.00390625, %v110_v43  ;;  %v1601_v43 = vld [vmem:[%s1777_s3 + $0x20] sm:$0xff] }
  0xbe   :  { %v143_v47 = vmul.f32 %v135_v39, %v126_v41  ;;  %v624_v39 = vld [vmem:[#allocation6 + $0xe0] sm:$0xff]  ;;  %v623_v41 = vld [vmem:[#allocation6 + $0xd8] sm:$0xff] }
  0xbf   :  { %v107_v49 = vpop.xlane.xlu0 %106  ;;  %v141_v51 = vmul.f32 %v133_v45, %v124_v46  ;;  %v620_v45 = vld [vmem:[#allocation6 + $0xc0] sm:$0xff]  ;;  %v1610_v46 = vld [vmem:[%s1777_s3 + $0x28] sm:$0xff] }
  0xc0   :  { %1151 = vmatpush3.msra.mxu1 %v143_v47  ;;  %v123_v52 = vmul.f32 0.00390625, %v107_v49  ;;  %v104_v53 = vpop.xlane.xlu1 %103  ;;  %v619_v47 = vld [vmem:[#allocation6 + $0xb8] sm:$0xff]  ;;  %v1615_v49 = vld [vmem:[%s1777_s3 + $0x30] sm:$0xff] }
  0xc1   :  { %1152 = vmatprep.subr.mxu1 %v1314_v25  ;;  %v122_v55 = vmul.f32 0.00390625, %v104_v53  ;;  %v615_v53 = vld [vmem:[#allocation6 + $0x98] sm:$0xff] }
  0xc2   :  { %v140_v56 = vmul.f32 %v132_v48, %v123_v52  ;;  %1153 = vmatpush3.msra.mxu1 %v142_v50  ;;  %v618_v48 = vld [vmem:[#allocation6 + $0xb0] sm:$0xff]  ;;  %v617_v50 = vld [vmem:[#allocation6 + $0xa8] sm:$0xff]  ;;  %v1624_v52 = vld [vmem:[%s1777_s3 + $0x38] sm:$0xff] }
  0xc3   :  { %1154 = vmatprep.subr.mxu1 %v1314_v25  ;;  %v101_v58 = vpop.xlane.xlu0 %100  ;;  %v139_v59 = vmul.f32 %v131_v54, %v122_v55  ;;  %v614_v54 = vld [vmem:[#allocation6 + $0x90] sm:$0xff]  ;;  %v613_v55 = vld [vmem:[#allocation6 + $0x88] sm:$0xff] }
  0xc4   :  { %1155 = vmatpush3.msra.mxu1 %v141_v51  ;;  %v121_v60 = vmul.f32 0.00390625, %v101_v58  ;;  %v98_v61 = vpop.xlane.xlu1 %97  ;;  %v616_v51 = vld [vmem:[#allocation6 + $0xa0] sm:$0xff]  ;;  %v610_v58 = vld [vmem:[#allocation6 + $0x70] sm:$0xff] }
  0xc5   :  { %1156 = vmatprep.subr.mxu1 %v1314_v25  ;;  %v120_v63 = vmul.f32 0.00390625, %v98_v61  ;;  %v607_v61 = vld [vmem:[#allocation6 + $0x58] sm:$0xff] }
  0xc6   :  { %v138_v3 = vmul.f32 %v130_v57, %v121_v60  ;;  %1157 = vmatpush3.msra.mxu1 %v140_v56  ;;  %v612_v56 = vld [vmem:[#allocation6 + $0x80] sm:$0xff]  ;;  %v611_v57 = vld [vmem:[#allocation6 + $0x78] sm:$0xff] }
  0xc7   :  { %1158 = vmatprep.subr.mxu1 %v1314_v25  ;;  %v137_v7 = vmul.f32 %v129_v62, %v120_v63  ;;  %v608_v60 = vld [vmem:[#allocation6 + $0x60] sm:$0xff]  ;;  %v522_v62 = vstv %s1626_s13 }
  0xc8   :  { %1159 = vmatpush3.msra.mxu1 %v139_v59  ;;  %v498_v8 = vpop.permute.xlu1 %497  ;;  %v609_v59 = vld [vmem:[#allocation6 + $0x68] sm:$0xff] }
  0xc9   :  { %1160 = vmatprep.subr.mxu1 %v1314_v25  ;;  %v518_v17 = vmul.f32 %v498_v8, %v1412_v4  ;;  %v517_v26 = vmul.f32 %v498_v8, %v1405_v2 }
  0xca   :  { %1161 = vmatpush3.msra.mxu1 %v138_v3  ;;  %v606_v3 = vld [vmem:[#allocation6 + $0x50] sm:$0xff] }
  0xcb   :  { %1162 = vmatprep.subr.mxu1 %v1314_v25  ;;  %v503_v12 = vpop.permute.xlu0 %502 }
  0xcc   :  { %1163 = vmatpush3.msra.mxu1 %v137_v7  ;;  %v493_v18 = vpop.permute.xlu1 %492  ;;  %v519_v23 = vmul.f32 %v503_v12, %v1395_v0  ;;  %v520_v24 = vmul.f32 %v503_v12, %v1400_v1  ;;  %v605_v7 = vld [vmem:[#allocation6 + $0x48] sm:$0xff] }
  0xcd   :  { %1165 = vmatmul.mubr.msk.f32.vlgmr.msra.gmra.mxu1 %vm152_vm1, %v128_v11  ;;  %v516_v27 = vmul.f32 %v493_v18, %v1422_v6  ;;  %v515_v28 = vmul.f32 %v493_v18, %v1417_v5  ;;  %v602_v18 = vld [vmem:[#allocation6 + $0x30] sm:$0xff] }
  0xce   :  { %539 = vmatprep.subr.mxu1 %v520_v24  ;;  %587 = vmatprep.mubr.f32.mxu1 %v1314_v25  ;;  %v601_v24 = vld [vmem:[#allocation6 + $0x28] sm:$0xff] }
  0xcf   :  { %540 = vmatpush1.msra.mxu1 %v519_v23 }
  0xd0   :  { %v488_v29 = vpop.permute.xlu1 %487  ;;  %541 = vmatprep.subr.mxu1 %v518_v17  ;;  %v603_v17 = vld [vmem:[#allocation6 + $0x38] sm:$0xff] }
  0xd1   :  { %v513_v4 = vmul.f32 %v488_v29, %v1429_v9  ;;  %v514_v0 = vmul.f32 %v488_v29, %v1434_v10  ;;  %542 = vmatpush1.msra.mxu1 %v517_v26  ;;  %v600_v26 = vld [vmem:[#allocation6 + $0x20] sm:$0xff]  ;;  %v597_v29 = vld [vmem:[#allocation6 + $0x8] sm:$0xff] }
  0xd2   :  { %543 = vmatprep.subr.mxu1 %v516_v27  ;;  %v599_v27 = vld [vmem:[#allocation6 + $0x18] sm:$0xff] }
  0xd3   :  { %544 = vmatpush1.msra.mxu1 %v515_v28  ;;  %v598_v28 = vld [vmem:[#allocation6 + $0x10] sm:$0xff] }
  0xd4   :  { %v483_v1 = vpop.permute.xlu1 %482  ;;  %545 = vmatprep.subr.mxu1 %v514_v0  ;;  %v659_v0 = vld [vmem:[#allocation6 + $0x1f8] sm:$0xff] }
  0xd5   :  { %v511_v2 = vmul.f32 %v483_v1, %v1443_v13  ;;  %v512_v6 = vmul.f32 %v483_v1, %v1448_v14  ;;  %546 = vmatpush1.msra.mxu1 %v513_v4  ;;  %v596_v4 = vld [vmem:[#allocation6] sm:$0xff]  ;;  %v658_v1 = vld [vmem:[#allocation6 + $0x1f0] sm:$0xff] }
  0xd7   :  { %547 = vmatprep.subr.mxu1 %v512_v6  ;;  %v656_v6 = vld [vmem:[#allocation6 + $0x1e0] sm:$0xff] }
  0xd8   :  { %v478_v30 = vpop.permute.xlu1 %477  ;;  %548 = vmatpush1.msra.mxu1 %v511_v2  ;;  %v657_v2 = vld [vmem:[#allocation6 + $0x1e8] sm:$0xff] }
  0xd9   :  { %v509_v5 = vmul.f32 %v478_v30, %v1453_v15  ;;  %v510_v31 = vmul.f32 %v478_v30, %v1458_v16  ;;  %v1570_v15 = vld [vmem:[%s1777_s3] sm:$0xff]  ;;  %v655_v30 = vld [vmem:[#allocation6 + $0x1d8] sm:$0xff] }
  0xda   :  { %1169 = vmatprep.mubr.msk.f32.mxu0 %vm235_vm2, %v1570_v15  ;;  %v1106_v16 = vld [vmem:[%s1780_s6] ss:$0 sm:$0xff]  ;;  %s1280_s6 = scalar_lea.vmem %s1093_s20, 2048 }
  0xdb   :  { %549 = vmatprep.subr.mxu1 %v510_v31  ;;  %v653_v31 = vld [vmem:[#allocation6 + $0x1c8] sm:$0xff]  ;;  %p1281_p1 = scmp.ne.s32.totalorder %s1093_s20, %s1280_s6  ;;  %p1286_p3 = scmp.lt.s32.totalorder %s1280_s6, %s1280_s6 }
  0xdc   :  { %v473_v9 = vpop.permute.xlu1 %472  ;;  %550 = vmatpush1.msra.mxu1 %v509_v5  ;;  %v654_v5 = vld [vmem:[#allocation6 + $0x1d0] sm:$0xff] }
  0xdd   :  { %v507_v10 = vmul.f32 %v473_v9, %v1467_v19  ;;  %v508_v32 = vmul.f32 %v473_v9, %v1472_v20  ;;  %v652_v9 = vld [vmem:[#allocation6 + $0x1c0] sm:$0xff]  ;;  %p1287_p4 = por %p1286_p3, %p1285_p2 }
  0xdf   :  { %551 = vmatprep.subr.mxu1 %v508_v32  ;;  %v650_v32 = vld [vmem:[#allocation6 + $0x1b0] sm:$0xff]  ;;  %p1288_p5 = pnand %p1287_p4, %p1281_p1 }
  0xe0   :  { %v468_v33 = vpop.permute.xlu1 %467  ;;  %552 = vmatpush1.msra.mxu1 %v507_v10  ;;  %v651_v10 = vld [vmem:[#allocation6 + $0x1b8] sm:$0xff] }
  0xe1   :  { %v505_v13 = vmul.f32 %v468_v33, %v1477_v21  ;;  %v506_v14 = vmul.f32 %v468_v33, %v1482_v22  ;;  %v649_v33 = vld [vmem:[#allocation6 + $0x1a8] sm:$0xff] }
  0xe3   :  { %553 = vmatprep.subr.mxu1 %v506_v14  ;;  %v647_v14 = vld [vmem:[#allocation6 + $0x198] sm:$0xff] }
  0xe4   :  { %554 = vmatpush1.msra.mxu1 %v505_v13  ;;  %v648_v13 = vld [vmem:[#allocation6 + $0x1a0] sm:$0xff] }
  0xe5   :  { %1117 = vmatmul.mubr.msk.f32.vlgmr.msra.gmra.mxu1 %vm152_vm1, %v128_v11  ;;  %v604_v11 = vld [vmem:[#allocation6 + $0x40] sm:$0xff] }
 0x18d   :  { %v222_v19 = vpop.f32.mrf.mxu1 }
 0x18e   :  { %v223_v20 = vadd.f32 %v1106_v16, %v222_v19  ;;  %v646_v16 = vld [vmem:[#allocation6 + $0x190] sm:$0xff]  ;;  %v645_v19 = vld [vmem:[#allocation6 + $0x188] sm:$0xff] }
 0x18f   :  { %v1166_v21 = vpop.f32.mrf.mxu1 }
 0x190   :  { %v226_v22 = vmax.f32 %v223_v20, 0.0  ;;  %v644_v20 = vld [vmem:[#allocation6 + $0x180] sm:$0xff]  ;;  %v643_v21 = vld [vmem:[#allocation6 + $0x178] sm:$0xff] }
 0x192   :  { %1167 = vmatprep.subr.msk.mxu0 %vm260_vm3, %v226_v22 }
 0x193   :  { %1168 = vmatpush3.msk.msra.mxu0 %vm260_vm3, %v226_v22  ;;  %v642_v22 = vld [vmem:[#allocation6 + $0x170] sm:$0xff] }
 0x194   :  { %1170 = vmatmul.mubr.msk.f32.vlgmr.msra.gmra.mxu0 %vm235_vm2, %v1580_v34  ;;  %662 = vmatprep.subr.mxu0 %v627_v35  ;;  %v641_v35 = vld [vmem:[#allocation6 + $0x168] sm:$0xff] }
 0x195   :  { %663 = vmatpush1.msra.mxu0 %v626_v36  ;;  %1172 = vmatprep.mubr.msk.f32.mxu0 %vm235_vm2, %v1586_v37  ;;  %v640_v36 = vld [vmem:[#allocation6 + $0x160] sm:$0xff] }
 0x196   :  { %664 = vmatprep.subr.mxu0 %v625_v38  ;;  %v639_v38 = vld [vmem:[#allocation6 + $0x158] sm:$0xff] }
 0x197   :  { %665 = vmatpush1.msra.mxu0 %v624_v39  ;;  %v638_v39 = vld [vmem:[#allocation6 + $0x150] sm:$0xff] }
 0x198   :  { %1173 = vmatmul.mubr.msk.f32.gmra.mxu0 %vm235_vm2, %v1596_v40  ;;  %666 = vmatprep.subr.mxu0 %v623_v41  ;;  %v637_v41 = vld [vmem:[#allocation6 + $0x148] sm:$0xff] }
 0x199   :  { %667 = vmatpush1.msra.mxu0 %v622_v42  ;;  %1175 = vmatprep.mubr.msk.f32.mxu0 %vm235_vm2, %v1601_v43  ;;  %v636_v42 = vld [vmem:[#allocation6 + $0x140] sm:$0xff] }
 0x19a   :  { %668 = vmatprep.subr.mxu0 %v621_v44  ;;  %v635_v44 = vld [vmem:[#allocation6 + $0x138] sm:$0xff] }
 0x19b   :  { %669 = vmatpush1.msra.mxu0 %v620_v45  ;;  %v634_v45 = vld [vmem:[#allocation6 + $0x130] sm:$0xff] }
 0x19c   :  { %1176 = vmatmul.mubr.msk.f32.gmra.mxu0 %vm235_vm2, %v1610_v46  ;;  %670 = vmatprep.subr.mxu0 %v619_v47  ;;  %v633_v47 = vld [vmem:[#allocation6 + $0x128] sm:$0xff] }
 0x19d   :  { %671 = vmatpush1.msra.mxu0 %v618_v48  ;;  %1178 = vmatprep.mubr.msk.f32.mxu0 %vm235_vm2, %v1615_v49  ;;  %v632_v48 = vld [vmem:[#allocation6 + $0x120] sm:$0xff] }
 0x19e   :  { %672 = vmatprep.subr.mxu0 %v617_v50  ;;  %v631_v50 = vld [vmem:[#allocation6 + $0x118] sm:$0xff] }
 0x19f   :  { %673 = vmatpush1.msra.mxu0 %v616_v51 }
 0x1a0   :  { %1179 = vmatmul.mubr.msk.f32.gmra.mxu0 %vm235_vm2, %v1624_v52  ;;  %674 = vmatprep.subr.mxu0 %v615_v53  ;;  %v630_v53 = vld [vmem:[#allocation6 + $0x110] sm:$0xff] }
 0x1a1   :  { %675 = vmatpush1.msra.mxu0 %v614_v54  ;;  %v629_v54 = vld [vmem:[#allocation6 + $0x108] sm:$0xff] }
 0x1a2   :  { %676 = vmatprep.subr.mxu0 %v613_v55  ;;  %v628_v55 = vld [vmem:[#allocation6 + $0x100] sm:$0xff] }
 0x1a3   :  { %677 = vmatpush1.msra.mxu0 %v612_v56 }
 0x1a4   :  { %678 = vmatprep.subr.mxu0 %v611_v57  ;;  %v766_v57 = vld [vmem:[#allocation7 + $0xf8] sm:$0xff] }
 0x1a5   :  { %679 = vmatpush1.msra.mxu0 %v610_v58  ;;  %v1631_v63 = vpop.f32.mrf.mxu1  ;;  %801 = vmatprep.subr.mxu1 %v766_v57  ;;  %v765_v58 = vld [vmem:[#allocation7 + $0xf0] sm:$0xff]  ;;  %v775_v57 = vld [vmem:[#allocation7 + $0x140] sm:$0xff] }
 0x1a6   :  { %680 = vmatprep.subr.mxu0 %v609_v59  ;;  %v590_v51 = vadd.f32 %v1631_v63, %v522_v62  ;;  %802 = vmatpush1.msra.mxu1 %v765_v58  ;;  %v764_v59 = vld [vmem:[#allocation7 + $0xe8] sm:$0xff]  ;;  %v774_v58 = vld [vmem:[#allocation7 + $0x138] sm:$0xff] }
 0x1a7   :  { %681 = vmatpush1.msra.mxu0 %v608_v60  ;;  %v591_v8 = vpop.f32.mrf.mxu1  ;;  %803 = vmatprep.subr.mxu1 %v764_v59  ;;  %v763_v60 = vld [vmem:[#allocation7 + $0xe0] sm:$0xff]  ;;  %v760_v63 = vld [vmem:[#allocation7 + $0xc8] sm:$0xff]  ;;  %v773_v59 = vld [vmem:[#allocation7 + $0x130] sm:$0xff] }
 0x1a8   :  { %682 = vmatprep.subr.mxu0 %v607_v61  ;;  %v592_v12 = vadd.f32 %v591_v8, %v522_v62  ;;  %v594_v56 = vmax.f32 %v590_v51, 0.0  ;;  %804 = vmatpush1.msra.mxu1 %v763_v60  ;;  %v762_v61 = vld [vmem:[#allocation7 + $0xd8] sm:$0xff]  ;;  %v761_v62 = vld [vmem:[#allocation7 + $0xd0] sm:$0xff]  ;;  %v780_v51 = vld [vmem:[#allocation7 + $0x168] sm:$0xff] }
 0x1a9   :  { %683 = vmatpush1.msra.mxu0 %v606_v3  ;;  %805 = vmatprep.subr.mxu1 %v762_v61  ;;  %v759_v3 = vld [vmem:[#allocation7 + $0xc0] sm:$0xff]  ;;  %v757_v8 = vld [vmem:[#allocation7 + $0xb0] sm:$0xff]  ;;  %v772_v60 = vld [vmem:[#allocation7 + $0x128] sm:$0xff] }
 0x1aa   :  { %684 = vmatprep.subr.mxu0 %v605_v7  ;;  %v595_v23 = vmax.f32 %v592_v12, 0.0  ;;  %806 = vmatpush1.msra.mxu1 %v761_v62  ;;  %v758_v7 = vld [vmem:[#allocation7 + $0xb8] sm:$0xff]  ;;  %v755_v12 = vld [vmem:[#allocation7 + $0xa0] sm:$0xff] }
 0x1ab   :  { %685 = vmatpush1.msra.mxu0 %v604_v11  ;;  %807 = vmatprep.subr.mxu1 %v760_v63  ;;  %v756_v11 = vld [vmem:[#allocation7 + $0xa8] sm:$0xff]  ;;  %v771_v61 = vld [vmem:[#allocation7 + $0x120] sm:$0xff]  ;;  %v770_v62 = vld [vmem:[#allocation7 + $0x118] sm:$0xff] }
 0x1ac   :  { %686 = vmatprep.subr.mxu0 %v603_v17  ;;  %726 = vmatprep.mubr.f32.mxu0 %v595_v23  ;;  %v754_v17 = vld [vmem:[#allocation7 + $0x98] sm:$0xff]  ;;  %v752_v23 = vld [vmem:[#allocation7 + $0x88] sm:$0xff]  ;;  %v769_v63 = vld [vmem:[#allocation7 + $0x110] sm:$0xff] }
 0x1ad   :  { %687 = vmatpush1.msra.mxu0 %v602_v18  ;;  %808 = vmatpush1.msra.mxu1 %v759_v3  ;;  %v753_v18 = vld [vmem:[#allocation7 + $0x90] sm:$0xff]  ;;  %v768_v3 = vld [vmem:[#allocation7 + $0x108] sm:$0xff] }
 0x1ae   :  { %688 = vmatprep.subr.mxu0 %v601_v24  ;;  %809 = vmatprep.subr.mxu1 %v758_v7  ;;  %v751_v24 = vld [vmem:[#allocation7 + $0x80] sm:$0xff] }
 0x1af   :  { %689 = vmatpush1.msra.mxu0 %v600_v26  ;;  %810 = vmatpush1.msra.mxu1 %v757_v8  ;;  %v750_v26 = vld [vmem:[#allocation7 + $0x78] sm:$0xff]  ;;  %v767_v7 = vld [vmem:[#allocation7 + $0x100] sm:$0xff]  ;;  %v370_v8 = vld [vmem:[%s1781_s7 + $0x8] sm:$0xff] }
 0x1b0   :  { %690 = vmatprep.subr.mxu0 %v599_v27  ;;  %811 = vmatprep.subr.mxu1 %v756_v11  ;;  %v749_v27 = vld [vmem:[#allocation7 + $0x70] sm:$0xff] }
 0x1b1   :  { %691 = vmatpush1.msra.mxu0 %v598_v28  ;;  %812 = vmatpush1.msra.mxu1 %v755_v12  ;;  %v748_v28 = vld [vmem:[#allocation7 + $0x68] sm:$0xff]  ;;  %v369_v12 = vld [vmem:[%s1781_s7] sm:$0xff] }
 0x1b2   :  { %692 = vmatprep.subr.mxu0 %v597_v29  ;;  %813 = vmatprep.subr.mxu1 %v754_v17  ;;  %v747_v29 = vld [vmem:[#allocation7 + $0x60] sm:$0xff] }
 0x1b3   :  { %693 = vmatpush1.msra.mxu0 %v596_v4  ;;  %814 = vmatpush1.msra.mxu1 %v753_v18  ;;  %v746_v4 = vld [vmem:[#allocation7 + $0x58] sm:$0xff] }
 0x1b4   :  { %694 = vmatprep.subr.mxu0 %v659_v0  ;;  %815 = vmatprep.subr.mxu1 %v752_v23  ;;  %v745_v0 = vld [vmem:[#allocation7 + $0x50] sm:$0xff]  ;;  %v372_v23 = vld [vmem:[%s1781_s7 + $0x18] sm:$0xff] }
 0x1b5   :  { %695 = vmatpush2.msra.mxu0 %v658_v1  ;;  %816 = vmatpush1.msra.mxu1 %v751_v24  ;;  %v744_v1 = vld [vmem:[#allocation7 + $0x48] sm:$0xff] }
 0x1b6   :  { %696 = vmatprep.subr.mxu0 %v657_v2  ;;  %817 = vmatprep.subr.mxu1 %v750_v26  ;;  %v743_v2 = vld [vmem:[#allocation7 + $0x40] sm:$0xff] }
 0x1b7   :  { %697 = vmatpush2.msra.mxu0 %v656_v6  ;;  %818 = vmatpush1.msra.mxu1 %v749_v27  ;;  %v742_v6 = vld [vmem:[#allocation7 + $0x38] sm:$0xff] }
 0x1b8   :  { %698 = vmatprep.subr.mxu0 %v655_v30  ;;  %819 = vmatprep.subr.mxu1 %v748_v28  ;;  %v741_v30 = vld [vmem:[#allocation7 + $0x30] sm:$0xff] }
 0x1b9   :  { %699 = vmatpush2.msra.mxu0 %v654_v5  ;;  %820 = vmatpush1.msra.mxu1 %v747_v29  ;;  %v740_v5 = vld [vmem:[#allocation7 + $0x28] sm:$0xff]  ;;  %v371_v28 = vld [vmem:[%s1781_s7 + $0x10] sm:$0xff] }
 0x1ba   :  { %700 = vmatprep.subr.mxu0 %v653_v31  ;;  %821 = vmatprep.subr.mxu1 %v746_v4  ;;  %v739_v31 = vld [vmem:[#allocation7 + $0x20] sm:$0xff] }
 0x1bb   :  { %701 = vmatpush2.msra.mxu0 %v652_v9  ;;  %822 = vmatpush1.msra.mxu1 %v745_v0  ;;  %v738_v9 = vld [vmem:[#allocation7 + $0x18] sm:$0xff] }
 0x1bc   :  { %702 = vmatprep.subr.mxu0 %v651_v10  ;;  %823 = vmatprep.subr.mxu1 %v744_v1  ;;  %v737_v10 = vld [vmem:[#allocation7 + $0x10] sm:$0xff]  ;;  %v374_v1 = vld [vmem:[%s1781_s7 + $0x28] sm:$0xff] }
 0x1bd   :  { %703 = vmatpush2.msra.mxu0 %v650_v32  ;;  %824 = vmatpush1.msra.mxu1 %v743_v2  ;;  %v736_v32 = vld [vmem:[#allocation7 + $0x8] sm:$0xff] }
 0x1be   :  { %704 = vmatprep.subr.mxu0 %v649_v33  ;;  %825 = vmatprep.subr.mxu1 %v742_v6  ;;  %v735_v33 = vld [vmem:[#allocation7] sm:$0xff] }
 0x1bf   :  { %705 = vmatpush2.msra.mxu0 %v648_v13  ;;  %826 = vmatpush1.msra.mxu1 %v741_v30  ;;  %v798_v13 = vld [vmem:[#allocation7 + $0x1f8] sm:$0xff] }
 0x1c0   :  { %706 = vmatprep.subr.mxu0 %v647_v14  ;;  %827 = vmatprep.subr.mxu1 %v740_v5  ;;  %v797_v14 = vld [vmem:[#allocation7 + $0x1f0] sm:$0xff]  ;;  %v373_v5 = vld [vmem:[%s1781_s7 + $0x20] sm:$0xff] }
 0x1c1   :  { %707 = vmatpush2.msra.mxu0 %v646_v16  ;;  %828 = vmatpush1.msra.mxu1 %v739_v31  ;;  %v796_v16 = vld [vmem:[#allocation7 + $0x1e8] sm:$0xff] }
 0x1c2   :  { %708 = vmatprep.subr.mxu0 %v645_v19  ;;  %829 = vmatprep.subr.mxu1 %v738_v9  ;;  %v795_v19 = vld [vmem:[#allocation7 + $0x1e0] sm:$0xff] }
 0x1c3   :  { %709 = vmatpush2.msra.mxu0 %v644_v20  ;;  %830 = vmatpush1.msra.mxu1 %v737_v10  ;;  %v794_v20 = vld [vmem:[#allocation7 + $0x1d8] sm:$0xff] }
 0x1c4   :  { %710 = vmatprep.subr.mxu0 %v643_v21  ;;  %831 = vmatprep.subr.mxu1 %v736_v32  ;;  %v793_v21 = vld [vmem:[#allocation7 + $0x1d0] sm:$0xff]  ;;  %v376_v32 = vld [vmem:[%s1781_s7 + $0x38] sm:$0xff] }
 0x1c5   :  { %711 = vmatpush2.msra.mxu0 %v642_v22  ;;  %832 = vmatpush1.msra.mxu1 %v735_v33  ;;  %v792_v22 = vld [vmem:[#allocation7 + $0x1c8] sm:$0xff] }
 0x1c6   :  { %712 = vmatprep.subr.mxu0 %v641_v35  ;;  %833 = vmatprep.subr.mxu1 %v798_v13  ;;  %v791_v35 = vld [vmem:[#allocation7 + $0x1c0] sm:$0xff] }
 0x1c7   :  { %713 = vmatpush2.msra.mxu0 %v640_v36  ;;  %834 = vmatpush2.msra.mxu1 %v797_v14  ;;  %v790_v36 = vld [vmem:[#allocation7 + $0x1b8] sm:$0xff] }
 0x1c8   :  { %714 = vmatprep.subr.mxu0 %v639_v38  ;;  %835 = vmatprep.subr.mxu1 %v796_v16  ;;  %v789_v38 = vld [vmem:[#allocation7 + $0x1b0] sm:$0xff] }
 0x1c9   :  { %715 = vmatpush2.msra.mxu0 %v638_v39  ;;  %836 = vmatpush2.msra.mxu1 %v795_v19  ;;  %v788_v39 = vld [vmem:[#allocation7 + $0x1a8] sm:$0xff]  ;;  %v375_v16 = vld [vmem:[%s1781_s7 + $0x30] sm:$0xff] }
 0x1ca   :  { %716 = vmatprep.subr.mxu0 %v637_v41  ;;  %837 = vmatprep.subr.mxu1 %v794_v20  ;;  %v787_v41 = vld [vmem:[#allocation7 + $0x1a0] sm:$0xff] }
 0x1cb   :  { %717 = vmatpush2.msra.mxu0 %v636_v42  ;;  %838 = vmatpush2.msra.mxu1 %v793_v21  ;;  %v786_v42 = vld [vmem:[#allocation7 + $0x198] sm:$0xff] }
 0x1cc   :  { %718 = vmatprep.subr.mxu0 %v635_v44  ;;  %839 = vmatprep.subr.mxu1 %v792_v22  ;;  %v785_v44 = vld [vmem:[#allocation7 + $0x190] sm:$0xff] }
 0x1cd   :  { %719 = vmatpush2.msra.mxu0 %v634_v45  ;;  %840 = vmatpush2.msra.mxu1 %v791_v35  ;;  %v784_v45 = vld [vmem:[#allocation7 + $0x188] sm:$0xff] }
 0x1ce   :  { %720 = vmatprep.subr.mxu0 %v633_v47  ;;  %841 = vmatprep.subr.mxu1 %v790_v36  ;;  %v783_v47 = vld [vmem:[#allocation7 + $0x180] sm:$0xff] }
 0x1cf   :  { %721 = vmatpush2.msra.mxu0 %v632_v48  ;;  %842 = vmatpush2.msra.mxu1 %v789_v38  ;;  %v782_v48 = vld [vmem:[#allocation7 + $0x178] sm:$0xff]  ;;  %v661_v38 = vstv %s1118_s24 }
 0x1d0   :  { %722 = vmatprep.subr.mxu0 %v631_v50  ;;  %843 = vmatprep.subr.mxu1 %v788_v39  ;;  %v781_v50 = vld [vmem:[#allocation7 + $0x170] sm:$0xff] }
 0x1d1   :  { %723 = vmatpush2.msra.mxu0 %v630_v53  ;;  %844 = vmatpush2.msra.mxu1 %v787_v41  ;;  %v779_v53 = vld [vmem:[#allocation7 + $0x160] sm:$0xff] }
 0x1d2   :  { %724 = vmatprep.subr.mxu0 %v629_v54  ;;  %845 = vmatprep.subr.mxu1 %v786_v42  ;;  %v778_v54 = vld [vmem:[#allocation7 + $0x158] sm:$0xff] }
 0x1d3   :  { %725 = vmatpush2.msra.mxu0 %v628_v55  ;;  %846 = vmatpush2.msra.mxu1 %v785_v44  ;;  %v777_v55 = vld [vmem:[#allocation7 + $0x150] sm:$0xff] }
 0x1d4   :  { %727 = vmatmul.mubr.f32.vlgmr.msra.gmra.mxu0 %v594_v56  ;;  %847 = vmatprep.subr.mxu1 %v784_v45  ;;  %v776_v56 = vld [vmem:[#allocation7 + $0x148] sm:$0xff] }
 0x1d5   :  { %950 = vmatprep.mubr.f32.mxu0 %v1314_v25  ;;  %848 = vmatpush2.msra.mxu1 %v783_v47 }
 0x1d6   :  { %849 = vmatprep.subr.mxu1 %v782_v48  ;;  %v410_v48 = vld [vmem:[%s1782_s8 + $0x8] sm:$0xff] }
 0x1d7   :  { %850 = vmatpush2.msra.mxu1 %v781_v50 }
 0x1d8   :  { %851 = vmatprep.subr.mxu1 %v780_v51  ;;  %v409_v51 = vld [vmem:[%s1782_s8] sm:$0xff] }
 0x1d9   :  { %852 = vmatpush2.msra.mxu1 %v779_v53 }
 0x1da   :  { %853 = vmatprep.subr.mxu1 %v778_v54 }
 0x1db   :  { %854 = vmatpush2.msra.mxu1 %v777_v55 }
 0x1dc   :  { %855 = vmatprep.subr.mxu1 %v776_v56 }
 0x1dd   :  { %856 = vmatpush2.msra.mxu1 %v775_v57  ;;  %v411_v57 = vld [vmem:[%s1782_s8 + $0x10] sm:$0xff] }
 0x1de   :  { %857 = vmatprep.subr.mxu1 %v774_v58  ;;  %v412_v58 = vld [vmem:[%s1782_s8 + $0x18] sm:$0xff] }
 0x1df   :  { %858 = vmatpush2.msra.mxu1 %v773_v59 }
 0x1e0   :  { %859 = vmatprep.subr.mxu1 %v772_v60 }
 0x1e1   :  { %860 = vmatpush2.msra.mxu1 %v771_v61 }
 0x1e2   :  { %861 = vmatprep.subr.mxu1 %v770_v62 }
 0x1e3   :  { %862 = vmatpush2.msra.mxu1 %v769_v63 }
 0x1e4   :  { %863 = vmatprep.subr.mxu1 %v768_v3  ;;  %v413_v3 = vld [vmem:[%s1782_s8 + $0x20] sm:$0xff] }
 0x1e5   :  { %864 = vmatpush2.msra.mxu1 %v767_v7  ;;  %v414_v7 = vld [vmem:[%s1782_s8 + $0x28] sm:$0xff] }
 0x254   :  { %v1171_v11 = vpop.f32.mrf.mxu0 }
 0x255   :  { %v378_v17 = vmul.f32 %v1171_v11, %v370_v8 }
 0x256   :  { %v330_v18 = vpop.f32.mrf.mxu0 }
 0x257   :  { %v377_v24 = vmul.f32 %v369_v12, %v330_v18  ;;  %v388_v26 = vsel %vm235_vm2, %v378_v17, 0.0 }
 0x258   :  { %389 = vadd.xlane.f32.xlu0 %v388_v26  ;;  %v1174_v27 = vpop.f32.mrf.mxu0  ;;  %v416_v26 = vld [vmem:[%s1782_s8 + $0x38] sm:$0xff] }
 0x259   :  { %v380_v29 = vmul.f32 %v1174_v27, %v372_v23  ;;  %v385_v4 = vsel %vm235_vm2, %v377_v24, 0.0  ;;  %v415_v24 = vld [vmem:[%s1782_s8 + $0x30] sm:$0xff]  ;;  %s1119_s8 = sld [smem:[#allocation2 + $0x2]] }
 0x25a   :  { %386 = vadd.xlane.f32.xlu1 %v385_v4  ;;  %v340_v0 = vpop.f32.mrf.mxu0 }
 0x25b   :  { %v379_v2 = vmul.f32 %v371_v28, %v340_v0  ;;  %v394_v6 = vsel %vm235_vm2, %v380_v29, 0.0 }
 0x25c   :  { %v1177_v30 = vpop.f32.mrf.mxu0 }
 0x25d   :  { %v382_v31 = vmul.f32 %v1177_v30, %v374_v1  ;;  %v391_v9 = vsel %vm235_vm2, %v379_v2, 0.0 }
 0x25e   :  { %395 = vadd.xlane.f32.xlu1 %v394_v6  ;;  %392 = vadd.xlane.f32.xlu0 %v391_v9  ;;  %v350_v10 = vpop.f32.mrf.mxu0 }
 0x25f   :  { %v381_v33 = vmul.f32 %v373_v5, %v350_v10  ;;  %v400_v13 = vsel %vm235_vm2, %v382_v31, 0.0 }
 0x260   :  { %v1180_v14 = vpop.f32.mrf.mxu0 }
 0x261   :  { %v384_v19 = vmul.f32 %v1180_v14, %v376_v32  ;;  %v397_v20 = vsel %vm235_vm2, %v381_v33, 0.0 }
 0x262   :  { %401 = vadd.xlane.f32.xlu1 %v400_v13  ;;  %398 = vadd.xlane.f32.xlu0 %v397_v20  ;;  %v360_v21 = vpop.f32.mrf.mxu0 }
 0x263   :  { %v383_v22 = vmul.f32 %v375_v16, %v360_v21  ;;  %v406_v35 = vsel %vm235_vm2, %v384_v19, 0.0 }
 0x265   :  { %v403_v36 = vsel %vm235_vm2, %v383_v22, 0.0 }
 0x266   :  { %407 = vadd.xlane.f32.xlu1 %v406_v35  ;;  %404 = vadd.xlane.f32.xlu0 %v403_v36 }
 0x294   :  { %v728_v39 = vpop.f32.mrf.mxu0 }
 0x295   :  { %v729_v41 = vadd.f32 %v728_v39, %v661_v38 }
 0x296   :  { %v730_v42 = vpop.f32.mrf.mxu0 }
 0x297   :  { %v731_v44 = vadd.f32 %v730_v42, %v661_v38  ;;  %v733_v47 = vmax.f32 %v729_v41, 0.0 }
 0x299   :  { %v734_v45 = vmax.f32 %v731_v44, 0.0 }
 0x29b   :  { %865 = vmatprep.mubr.f32.mxu1 %v734_v45 }
 0x29c   :  { %866 = vmatmul.mubr.f32.vlgmr.msra.gmra.mxu1 %v733_v47 }
 0x2e1   :  { %v390_v50 = vpop.xlane.xlu0 %389 }
 0x2e2   :  { %v418_v53 = vadd.f32 %v410_v48, %v390_v50  ;;  %v800_v50 = vstv %s1119_s8 }
 0x2e3   :  { %v387_v54 = vpop.xlane.xlu1 %386 }
 0x2e4   :  { %v426_v55 = vmul.f32 0.5, %v418_v53  ;;  %v417_v56 = vadd.f32 %v409_v51, %v387_v54 }
 0x2e6   :  { %1192 = vtanh.f32 %v426_v55  ;;  %v425_v59 = vmul.f32 0.5, %v417_v56 }
 0x2e7   :  { %v393_v60 = vpop.xlane.xlu0 %392  ;;  %v396_v61 = vpop.xlane.xlu1 %395 }
 0x2e8   :  { %1194 = vtanh.f32 %v425_v59  ;;  %v419_v62 = vadd.f32 %v411_v57, %v393_v60  ;;  %v420_v63 = vadd.f32 %v412_v58, %v396_v61 }
 0x2ea   :  { %v427_v8 = vmul.f32 0.5, %v419_v62  ;;  %v428_v11 = vmul.f32 0.5, %v420_v63 }
 0x2eb   :  { %v399_v12 = vpop.xlane.xlu0 %398  ;;  %v402_v17 = vpop.xlane.xlu1 %401 }
 0x2ec   :  { %1196 = vtanh.f32 %v427_v8  ;;  %v421_v18 = vadd.f32 %v413_v3, %v399_v12  ;;  %v422_v23 = vadd.f32 %v414_v7, %v402_v17  ;;  %v1215_v17 = vld [vmem:[%s1775_s1 + $0x18] sm:$0xff] }
 0x2ed   :  { %1198 = vtanh.f32 %v428_v11 }
 0x2ee   :  { %v429_v27 = vmul.f32 0.5, %v421_v18  ;;  %v430_v28 = vmul.f32 0.5, %v422_v23 }
 0x2ef   :  { %v405_v29 = vpop.xlane.xlu0 %404  ;;  %v408_v4 = vpop.xlane.xlu1 %407 }
 0x2f0   :  { %1200 = vtanh.f32 %v429_v27  ;;  %v423_v0 = vadd.f32 %v415_v24, %v405_v29  ;;  %v424_v1 = vadd.f32 %v416_v26, %v408_v4  ;;  %v1216_v26 = vld [vmem:[%s1775_s1 + $0x20] sm:$0xff] }
 0x2f1   :  { %1202 = vtanh.f32 %v430_v28 }
 0x2f2   :  { %v431_v2 = vmul.f32 0.5, %v423_v0  ;;  %v432_v6 = vmul.f32 0.5, %v424_v1  ;;  %v1217_v0 = vld [vmem:[%s1775_s1 + $0x28] sm:$0xff] }
 0x2f3   :  { %v1193_v30 = vpop.eup %1192 }
 0x2f4   :  { %1204 = vtanh.f32 %v431_v2  ;;  %v442_v5 = vmul.f32 0.5, %v1193_v30  ;;  %v1218_v30 = vld [vmem:[%s1775_s1 + $0x30] sm:$0xff] }
 0x2f5   :  { %v1195_v31 = vpop.eup %1194  ;;  %1206 = vtanh.f32 %v432_v6 }
 0x2f6   :  { %v450_v9 = vadd.f32 0.5, %v442_v5  ;;  %v441_v10 = vmul.f32 0.5, %v1195_v31 }
 0x2f8   :  { %1006 = vperm.xlu1 %1191, %v450_v9   ;;  %v449_v32 = vadd.f32 0.5, %v441_v10 }
 0x2f9   :  { %v1197_v33 = vpop.eup %1196 }
 0x2fa   :  { %v1199_v13 = vpop.eup %1198  ;;  %1001 = vperm.xlu0 %1190, %v449_v32   ;;  %v443_v14 = vmul.f32 0.5, %v1197_v33  ;;  %v1219_v32 = vld [vmem:[%s1775_s1 + $0x38] sm:$0xff] }
 0x2fb   :  { %v444_v16 = vmul.f32 0.5, %v1199_v13 }
 0x2fc   :  { %v451_v19 = vadd.f32 0.5, %v443_v14 }
 0x2fd   :  { %v1201_v20 = vpop.eup %1200  ;;  %v452_v21 = vadd.f32 0.5, %v444_v16  ;;  %v1220_v16 = vld [vmem:[%s1775_s1 + $0x40] sm:$0xff] }
 0x2fe   :  { %v1203_v22 = vpop.eup %1202  ;;  %1011 = vperm.xlu1 %1191, %v451_v19   ;;  %v445_v35 = vmul.f32 0.5, %v1201_v20 }
 0x2ff   :  { %1016 = vperm.xlu0 %1190, %v452_v21   ;;  %v446_v36 = vmul.f32 0.5, %v1203_v22 }
 0x300   :  { %v453_v38 = vadd.f32 0.5, %v445_v35  ;;  %v1221_v35 = vld [vmem:[%s1775_s1 + $0x48] sm:$0xff] }
 0x301   :  { %v1205_v39 = vpop.eup %1204  ;;  %v454_v41 = vadd.f32 0.5, %v446_v36 }
 0x302   :  { %v1207_v42 = vpop.eup %1206  ;;  %1021 = vperm.xlu1 %1191, %v453_v38   ;;  %v447_v44 = vmul.f32 0.5, %v1205_v39 }
 0x303   :  { %1026 = vperm.xlu0 %1190, %v454_v41   ;;  %v448_v45 = vmul.f32 0.5, %v1207_v42  ;;  %v1222_v41 = vld [vmem:[%s1775_s1 + $0x50] sm:$0xff] }
 0x304   :  { %v455_v47 = vadd.f32 0.5, %v447_v44 }
 0x305   :  { %v456_v48 = vadd.f32 0.5, %v448_v45 }
 0x306   :  { %1031 = vperm.xlu1 %1191, %v455_v47  }
 0x307   :  { %1036 = vperm.xlu0 %1190, %v456_v48   ;;  %v1223_v48 = vld [vmem:[%s1775_s1 + $0x58] sm:$0xff] }
 0x35c   :  { %v867_v51 = vpop.f32.mrf.mxu1 }
 0x35d   :  { %v868_v53 = vadd.f32 %v867_v51, %v800_v50 }
 0x35e   :  { %v869_v54 = vpop.f32.mrf.mxu1 }
 0x35f   :  { %v872_v55 = vmul.f32 0.5, %v868_v53  ;;  %v870_v56 = vadd.f32 %v869_v54, %v800_v50  ;;  %v1224_v54 = vld [vmem:[%s1775_s1 + $0x60] sm:$0xff] }
 0x361   :  { %1208 = vtanh.f32 %v872_v55  ;;  %v873_v57 = vmul.f32 0.5, %v870_v56 }
 0x363   :  { %1210 = vtanh.f32 %v873_v57 }
 0x36e   :  { %v1209_v58 = vpop.eup %1208 }
 0x36f   :  { %v876_v60 = vmul.f32 0.5, %v1209_v58 }
 0x370   :  { %v1211_v59 = vpop.eup %1210 }
 0x371   :  { %v877_v61 = vmul.f32 0.5, %v1211_v59  ;;  %v878_v63 = vadd.f32 0.5, %v876_v60  ;;  %v1225_v59 = vld [vmem:[%s1775_s1 + $0x68] sm:$0xff] }
 0x373   :  { %v879_v62 = vadd.f32 0.5, %v877_v61 }
 0x375   :  { %1120 = vmatprep.subr.msk.mxu0 %vm260_vm3, %v879_v62 }
 0x376   :  { %1121 = vmatpush1.msk.msra.mxu0 %vm260_vm3, %v878_v63  ;;  %v1226_v63 = vld [vmem:[%s1775_s1 + $0x70] sm:$0xff] }
 0x377   :  { %1122 = vmatmul.mubr.msk.f32.vlgmr.msra.gmra.mxu0 %vm235_vm2, %v1570_v15  ;;  %v1002_v15 = vpop.permute.xlu0 %1001 }
 0x378   :  { %956 = vmatprep.mubr.f32.mxu0 %v1314_v25 }
 0x37b   :  { %1123 = vmatmul.mubr.msk.f32.gmra.mxu0 %vm235_vm2, %v1580_v34  ;;  %v1212_v34 = vld [vmem:[%s1775_s1] sm:$0xff]  ;;  %v1017_v29 = vpop.permute.xlu0 %1016 }
 0x37c   :  { %962 = vmatprep.mubr.f32.mxu0 %v1314_v25  ;;  %v1045_v5 = vmul.f32 %v1218_v30, %v1017_v29  ;;  %v1046_v33 = vmul.f32 %v1219_v32, %v1017_v29 }
 0x37f   :  { %1124 = vmatmul.mubr.msk.f32.gmra.mxu0 %vm235_vm2, %v1586_v37  ;;  %v1039_v37 = vmul.f32 %v1212_v34, %v1002_v15  ;;  %v1027_v21 = vpop.permute.xlu0 %1026 }
 0x380   :  { %968 = vmatprep.mubr.f32.mxu0 %v1314_v25  ;;  %v1049_v42 = vmul.f32 %v1222_v41, %v1027_v21  ;;  %v1050_v50 = vmul.f32 %v1223_v48, %v1027_v21 }
 0x383   :  { %1125 = vmatmul.mubr.msk.f32.gmra.mxu0 %vm235_vm2, %v1596_v40  ;;  %v1007_v40 = vpop.permute.xlu1 %1006  ;;  %v1037_v57 = vpop.permute.xlu0 %1036 }
 0x384   :  { %974 = vmatprep.mubr.f32.mxu0 %v1314_v25  ;;  %v1042_v18 = vmul.f32 %v1215_v17, %v1007_v40 }
 0x387   :  { %1126 = vmatmul.mubr.msk.f32.gmra.mxu0 %vm235_vm2, %v1601_v43  ;;  %v1012_v11 = vpop.permute.xlu1 %1011 }
 0x388   :  { %980 = vmatprep.mubr.f32.mxu0 %v1314_v25  ;;  %v1043_v27 = vmul.f32 %v1216_v26, %v1012_v11  ;;  %v1044_v1 = vmul.f32 %v1217_v0, %v1012_v11 }
 0x38b   :  { %1127 = vmatmul.mubr.msk.f32.gmra.mxu0 %vm235_vm2, %v1610_v46  ;;  %v1213_v46 = vld [vmem:[%s1775_s1 + $0x8] sm:$0xff]  ;;  %v1022_v9 = vpop.permute.xlu1 %1021 }
 0x38c   :  { %986 = vmatprep.mubr.f32.mxu0 %v1314_v25  ;;  %v1040_v3 = vmul.f32 %v1213_v46, %v1002_v15  ;;  %v1047_v19 = vmul.f32 %v1220_v16, %v1022_v9  ;;  %v1048_v36 = vmul.f32 %v1221_v35, %v1022_v9  ;;  %v1053_v15 = vmul.f32 %v1226_v63, %v1037_v57 }
 0x38f   :  { %1128 = vmatmul.mubr.msk.f32.gmra.mxu0 %vm235_vm2, %v1615_v49  ;;  %v1032_v45 = vpop.permute.xlu1 %1031 }
 0x390   :  { %992 = vmatprep.mubr.f32.mxu0 %v1314_v25  ;;  %v1214_v25 = vld [vmem:[%s1775_s1 + $0x10] sm:$0xff]  ;;  %v1051_v55 = vmul.f32 %v1224_v54, %v1032_v45  ;;  %v1052_v60 = vmul.f32 %v1225_v59, %v1032_v45 }
 0x393   :  { %1129 = vmatmul.mubr.msk.f32.gmra.mxu0 %vm235_vm2, %v1624_v52  ;;  %v1041_v52 = vmul.f32 %v1214_v25, %v1007_v40  ;;  %v1227_v40 = vld [vmem:[%s1775_s1 + $0x78] sm:$0xff] }
 0x437   :  { %v952_v43 = vpop.f32.mrf.mxu0 }
 0x438   :  { %v1055_v7 = vmul.f32 %v1039_v37, %v952_v43  ;;  %v1054_v43 = vmul.f32 %v1227_v40, %v1037_v57 }
 0x439   :  { %v954_v49 = vpop.f32.mrf.mxu0 }
 0x43a   :  { %1071 = vst [vmem:[#allocation9] sm:$0xff] %v1055_v7  ;;  %v1056_v8 = vmul.f32 %v1040_v3, %v954_v49 }
 0x43b   :  { %v958_v12 = vpop.f32.mrf.mxu0 }
 0x43c   :  { %1072 = vst [vmem:[#allocation9 + $0x8] sm:$0xff] %v1056_v8  ;;  %v1057_v23 = vmul.f32 %v1041_v52, %v958_v12 }
 0x43d   :  { %v960_v24 = vpop.f32.mrf.mxu0 }
 0x43e   :  { %1073 = vst [vmem:[#allocation9 + $0x10] sm:$0xff] %v1057_v23  ;;  %v1058_v28 = vmul.f32 %v1042_v18, %v960_v24 }
 0x43f   :  { %v964_v4 = vpop.f32.mrf.mxu0 }
 0x440   :  { %1074 = vst [vmem:[#allocation9 + $0x18] sm:$0xff] %v1058_v28  ;;  %v1059_v2 = vmul.f32 %v1043_v27, %v964_v4 }
 0x441   :  { %v966_v6 = vpop.f32.mrf.mxu0 }
 0x442   :  { %1075 = vst [vmem:[#allocation9 + $0x20] sm:$0xff] %v1059_v2  ;;  %v1060_v31 = vmul.f32 %v1044_v1, %v966_v6 }
 0x443   :  { %v970_v10 = vpop.f32.mrf.mxu0 }
 0x444   :  { %1076 = vst [vmem:[#allocation9 + $0x28] sm:$0xff] %v1060_v31  ;;  %v1061_v13 = vmul.f32 %v1045_v5, %v970_v10 }
 0x445   :  { %v972_v14 = vpop.f32.mrf.mxu0 }
 0x446   :  { %1077 = vst [vmem:[#allocation9 + $0x30] sm:$0xff] %v1061_v13  ;;  %v1062_v20 = vmul.f32 %v1046_v33, %v972_v14 }
 0x447   :  { %v976_v22 = vpop.f32.mrf.mxu0 }
 0x448   :  { %1078 = vst [vmem:[#allocation9 + $0x38] sm:$0xff] %v1062_v20  ;;  %v1063_v38 = vmul.f32 %v1047_v19, %v976_v22 }
 0x449   :  { %v978_v39 = vpop.f32.mrf.mxu0 }
 0x44a   :  { %1079 = vst [vmem:[#allocation9 + $0x40] sm:$0xff] %v1063_v38  ;;  %v1064_v44 = vmul.f32 %v1048_v36, %v978_v39 }
 0x44b   :  { %v982_v47 = vpop.f32.mrf.mxu0 }
 0x44c   :  { %1080 = vst [vmem:[#allocation9 + $0x48] sm:$0xff] %v1064_v44  ;;  %v1065_v51 = vmul.f32 %v1049_v42, %v982_v47 }
 0x44d   :  { %v984_v53 = vpop.f32.mrf.mxu0 }
 0x44e   :  { %1081 = vst [vmem:[#allocation9 + $0x50] sm:$0xff] %v1065_v51  ;;  %v1066_v56 = vmul.f32 %v1050_v50, %v984_v53 }
 0x44f   :  { %v988_v58 = vpop.f32.mrf.mxu0 }
 0x450   :  { %1082 = vst [vmem:[#allocation9 + $0x58] sm:$0xff] %v1066_v56  ;;  %v1067_v61 = vmul.f32 %v1051_v55, %v988_v58 }
 0x451   :  { %v990_v62 = vpop.f32.mrf.mxu0 }
 0x452   :  { %1083 = vst [vmem:[#allocation9 + $0x60] sm:$0xff] %v1067_v61  ;;  %v1068_v34 = vmul.f32 %v1052_v60, %v990_v62 }
 0x453   :  { %v994_v37 = vpop.f32.mrf.mxu0 }
 0x454   :  { %1084 = vst [vmem:[#allocation9 + $0x68] sm:$0xff] %v1068_v34  ;;  %v1069_v46 = vmul.f32 %v1053_v15, %v994_v37 }
 0x455   :  { %v996_v3 = vpop.f32.mrf.mxu0 }
 0x456   :  { %1085 = vst [vmem:[#allocation9 + $0x70] sm:$0xff] %v1069_v46  ;;  %v1070_v7 = vmul.f32 %v1054_v43, %v996_v3 }
 0x458   :  { %1086 = vst [vmem:[#allocation9 + $0x78] sm:$0xff] %v1070_v7 }
 0x459   :  { %1291 = shalt.err (!%p1288_p5)
}
 0x45a   :  { %1098 = dma.vmem_to_hbm [thread:$0]  %s1093_s20, 2048, %s1785_s11, [#allocation4], %s1310_s0, %s1310_s0, %s1311_s25  }
 0x45b   :  { %1306 = dma.done.wait [#allocation4], 2048  }
 0x45c   :  { %1307 = vsyncadd [#allocation4], 4294965248 }
 0x45d   :  { %1102 = vsyncpa [#allocation3], 1 }
 0x45e   :  { %1103 = vsyncpa [#allocation8], 1 }
 0x45f   :  { %1104 = vsyncpa [#allocation4], 1 }
 0x460   :  { %1105 = vsyncpa [#allocation5], 1 }

</bundles_post_ra>
